<compile_context>
chip_gen: v6e
topology: v6e:2x2x1
jax: 0.10.0
libtpu: 0.0.40
codegen_flags: <defaults>
</compile_context>

<pallas_src>
import numpy as np

import jax
import jax.numpy as jnp
from jax import lax
from jax.experimental import pallas as pl
from jax.experimental.pallas import tpu as pltpu


# ---------------------------------------------------------------------------
# Single fused Pallas kernel:
#   conv1+BN+ReLU -> conv2(stride2)+BN+ReLU -> 2x2 avgpool -> NCHW flatten
#   -> linear1+ReLU -> linear2 -> softmax(dim=1)
# ---------------------------------------------------------------------------
def _classifier_kernel(xe_ref, xo_ref, w1m_ref, b1_ref, w2m_ref, b2_ref,
                       wl1_ref, bl1_ref, wl2_ref, bl2_ref, out_ref):
    f32, bf16 = jnp.float32, jnp.bfloat16
    NB = xe_ref.shape[0]                   # batch tile
    Kin = xe_ref.shape[2]                  # (W+2)*Cin
    h2 = xe_ref.shape[1] - 1               # conv2 output rows per sample (8)
    H = 2 * h2                             # conv1 output rows per sample (16)
    L1 = w1m_ref.shape[2]                  # Wo1*C1 = 128 (lane-dense)
    M1 = NB * H                            # batch+parity stacked conv1 rows
    M2 = NB * h2                           # batch stacked conv2 rows

    xe = xe_ref[...]                       # padded rows 0,2,...,H     (NB, h2+1, Kin)
    xo = xo_ref[...]                       # padded rows 1,3,...,H+1   (NB, h2+1, Kin)

    # ---- conv1 (3x3, s=1, p=1) + folded-BN bias + ReLU --------------------
    # One dot per kernel-height tap, batch + output-row-parity stacked into M.
    # Per-sample row order of y1: [even ho=0,2,..,H-2 | odd ho=1,3,..,H-1].
    taps = (
        (xe[:, 0:h2, :],      xo[:, 0:h2, :]),        # di=0: rows 2u   | 2u+1
        (xo[:, 0:h2, :],      xe[:, 1:h2 + 1, :]),    # di=1: rows 2u+1 | 2u+2
        (xe[:, 1:h2 + 1, :],  xo[:, 1:h2 + 1, :]),    # di=2: rows 2u+2 | 2u+3
    )
    acc1 = None
    for di, (ev, od) in enumerate(taps):
        lhs = jnp.concatenate([ev, od], axis=1).reshape(M1, Kin).astype(bf16)
        t = jnp.dot(lhs, w1m_ref[di], preferred_element_type=f32)
        acc1 = t if acc1 is None else acc1 + t
    y1 = jnp.maximum(acc1 + b1_ref[...], 0.0)          # (M1, 128) f32
    y1 = y1.reshape(NB, H, L1)                         # [:, :h2]=even, [:, h2:]=odd rows

    # ---- conv2 (3x3, s=2, p=1) + folded-BN bias + ReLU --------------------
    # Stride-2 row gather is free: di=1 tap = even conv1 rows, di=2 tap = odd
    # rows, di=0 tap = odd rows shifted down one output row with a zero top.
    r1 = y1[:, 0:h2, :].reshape(M2, L1)                              # rows 2i
    r2 = y1[:, h2:H, :].reshape(M2, L1)                              # rows 2i+1
    zero_top = jnp.zeros((NB, 1, L1), f32)
    r0 = jnp.concatenate([zero_top, y1[:, h2:H - 1, :]], axis=1)     # rows 2i-1
    r0 = r0.reshape(M2, L1)
    lhs2 = jnp.concatenate([r0, r1, r2], axis=1).astype(bf16)        # (M2, 384)
    acc2 = jnp.dot(lhs2, w2m_ref[...], preferred_element_type=f32)
    y2 = jnp.maximum(acc2 + b2_ref[...], 0.0)                        # (M2, 128) f32
    y2 = y2.reshape(NB, h2, L1)

    # ---- 2x2 avg-pool + NCHW flatten + linear1 + ReLU (one dot) -----------
    flat = jnp.concatenate([y2[:, r, :] for r in range(h2)], axis=1)  # (NB, h2*128)
    hvec = jnp.dot(flat.astype(bf16), wl1_ref[...], preferred_element_type=f32)
    hvec = jnp.maximum(hvec + bl1_ref[...], 0.0)                      # (NB, HID) f32

    # ---- linear2 + softmax(dim=1) ------------------------------------------
    logits = (jnp.dot(hvec, wl2_ref[...], preferred_element_type=f32)
              + bl2_ref[...])                                         # (NB, NCLS)
    m = jnp.max(logits, axis=-1, keepdims=True)
    e = jnp.exp(logits - m)
    denom = jnp.sum(e, axis=-1, keepdims=True)
    out_ref[...] = (e * pl.reciprocal(denom, approx=True)).astype(out_ref.dtype)


# ---------------------------------------------------------------------------
# One-time static parameter repack (outside the hot path)
# ---------------------------------------------------------------------------
def pack_params(params, eps=1e-5):
    w_c1 = params["w_c1"]                       # (C1, Cin, 3, 3)
    w_c2 = params["w_c2"]                       # (C2, C1, 3, 3)
    C1, Cin, KH, KW = w_c1.shape
    C2 = w_c2.shape[0]
    HID, FLAT = params["w_l1"].shape
    NCLS = params["w_l2"].shape[0]

    Hp = Wp = int(np.sqrt(FLAT // C2))          # pooled spatial (4x4)
    Ho2, Wo2 = 2 * Hp, 2 * Wp                   # conv2 output (8x8)
    Ho1, Wo1 = 2 * Ho2, 2 * Wo2                 # conv1 output (16x16)
    Wpad = Wo1 + 2

    # eval-mode BN folds
    s1 = params["g1"] / jnp.sqrt(params["v1"] + eps)
    sh1 = params["b1"] - params["m1"] * s1
    s2 = params["g2"] / jnp.sqrt(params["v2"] + eps)
    sh2 = params["b2"] - params["m2"] * s2

    # conv1 -> 3 banded matrices w1m[di] : (Wpad*Cin, Wo1*C1); BN scale folded
    S1 = np.zeros((KW, Wpad, Wo1), np.float32)
    for dj in range(KW):
        for wo in range(Wo1):
            S1[dj, wo + dj, wo] = 1.0
    K1 = jnp.transpose(w_c1, (2, 3, 1, 0))                      # (kh,kw,Cin,C1)
    w1m = jnp.einsum("dwo,zdic->zwioc", jnp.asarray(S1), K1)
    w1m = w1m.reshape(KH, Wpad * Cin, Wo1 * C1)
    w1m = (w1m * jnp.tile(s1, Wo1)[None, None, :]).astype(jnp.bfloat16)
    b1t = jnp.tile(sh1, Wo1).reshape(1, Wo1 * C1).astype(jnp.float32)

    # conv2 (stride 2, pad 1 along W folded in), 3 taps stacked along K,
    # BN scale folded -> w2m : (3*Wo1*C1, Wo2*C2) = (384, 128)
    S2 = np.zeros((KW, Wo1, Wo2), np.float32)
    for dj in range(KW):
        for wo2 in range(Wo2):
            w_in = 2 * wo2 + dj - 1
            if 0 <= w_in < Wo1:
                S2[dj, w_in, wo2] = 1.0
    K2 = jnp.transpose(w_c2, (2, 3, 1, 0))                      # (kh,kw,C1,C2)
    w2m = jnp.einsum("dwo,zdic->zwioc", jnp.asarray(S2), K2)
    w2m = w2m.reshape(KH, Wo1 * C1, Wo2 * C2)
    w2m = w2m * jnp.tile(s2, Wo2)[None, None, :]
    w2m = w2m.reshape(KH * Wo1 * C1, Wo2 * C2).astype(jnp.bfloat16)
    b2t = jnp.tile(sh2, Wo2).reshape(1, Wo2 * C2).astype(jnp.float32)

    # linear1 with 2x2 avg-pool and NCHW flatten folded into one (1024, HID):
    #   wl1[r*128 + wo2*C2 + c, j] = 0.25 * W_l1[j, c*Hp*Wp + (r//2)*Wp + wo2//2]
    A = params["w_l1"].reshape(HID, C2, Hp, Wp)                 # (j,c,hp,wp)
    A = A[:, :, np.repeat(np.arange(Hp), 2), :]                 # (j,c,r,wp)
    A = A[:, :, :, np.repeat(np.arange(Wp), 2)]                 # (j,c,r,wo2)
    wl1 = 0.25 * jnp.transpose(A, (2, 3, 1, 0)).reshape(Ho2 * Wo2 * C2, HID)
    wl1 = wl1.astype(jnp.bfloat16)

    return dict(
        w1m=w1m, b1t=b1t, w2m=w2m, b2t=b2t,
        wl1=wl1, bl1=params["b_l1"].reshape(1, HID).astype(jnp.float32),
        wl2=params["w_l2"].T.astype(jnp.float32),
        bl2=params["b_l2"].reshape(1, NCLS).astype(jnp.float32),
    )


# ---------------------------------------------------------------------------
# Forward wrapper: one fused pallas_call over a (parallel) batch grid.
# ---------------------------------------------------------------------------
def classifier_forward(x_nchw, packed):
    """Forward pass. x_nchw: (N, Cin, H, W) like PyTorch."""
    N, Cin, H, W = x_nchw.shape
    NCLS = packed["bl2"].shape[1]
    Kin = (W + 2) * Cin

    # Tiny input prep (single XLA fusion): NCHW -> zero-padded, channel-packed
    # rows, split by padded-row parity so the kernel's stride-2 row handling
    # is contiguous slices (no gather, no selection matmuls).
    x_nhwc = jnp.transpose(x_nchw, (0, 2, 3, 1)).astype(jnp.float32)
    xp = jnp.pad(x_nhwc, ((0, 0), (1, 1), (1, 1), (0, 0)))
    xp = xp.reshape(N, H + 2, Kin)
    xp_e = xp[:, 0::2, :]                  # padded rows 0,2,...,H     (N, H/2+1, Kin)
    xp_o = xp[:, 1::2, :]                  # padded rows 1,3,...,H+1   (N, H/2+1, Kin)

    # Batch tile: whole (tiny) batch per grid step here; for large batches NB
    # would be a tile and the grid pipelines inputs/outputs while the weight
    # blocks (index 0 every step) stay VMEM-resident.
    NB = N
    grid = (N // NB,)

    def batch_spec(shape):
        nd = len(shape)
        return pl.BlockSpec((NB,) + tuple(shape[1:]),
                            lambda b, _nd=nd: (b,) + (0,) * (_nd - 1))

    def resident_spec(shape):
        nd = len(shape)
        return pl.BlockSpec(tuple(shape), lambda b, _nd=nd: (0,) * _nd)

    args = (xp_e, xp_o, packed["w1m"], packed["b1t"], packed["w2m"],
            packed["b2t"], packed["wl1"], packed["bl1"], packed["wl2"],
            packed["bl2"])
    in_specs = ([batch_spec(xp_e.shape), batch_spec(xp_o.shape)]
                + [resident_spec(a.shape) for a in args[2:]])

    return pl.pallas_call(
        _classifier_kernel,
        out_shape=jax.ShapeDtypeStruct((N, NCLS), jnp.float32),
        grid=grid,
        in_specs=in_specs,
        out_specs=pl.BlockSpec((NB, NCLS), lambda b: (b, 0)),
        compiler_params=pltpu.CompilerParams(
            dimension_semantics=("parallel",)),
    )(*args)


# ---------------------------------------------------------------------------
# Pure-JAX reference (operates on the raw, un-packed f32 parameters)
# ---------------------------------------------------------------------------
def reference_forward(x_nchw, params, eps=1e-5):
    def bn(y, g, b, m, v):
        s = g / jnp.sqrt(v + eps)
        return y * s[None, :, None, None] + (b - m * s)[None, :, None, None]

    y = lax.conv_general_dilated(x_nchw, params["w_c1"], (1, 1), [(1, 1), (1, 1)],
                                 dimension_numbers=("NCHW", "OIHW", "NCHW"))
    y = jnp.maximum(bn(y, params["g1"], params["b1"], params["m1"], params["v1"]), 0.0)
    y = lax.conv_general_dilated(y, params["w_c2"], (2, 2), [(1, 1), (1, 1)],
                                 dimension_numbers=("NCHW", "OIHW", "NCHW"))
    y = jnp.maximum(bn(y, params["g2"], params["b2"], params["m2"], params["v2"]), 0.0)
    N, C, H, W = y.shape
    y = y.reshape(N, C, H // 2, 2, W // 2, 2).mean(axis=(3, 5))
    flat = y.reshape(N, -1)
    h = jnp.maximum(flat @ params["w_l1"].T + params["b_l1"], 0.0)
    logits = h @ params["w_l2"].T + params["b_l2"]
    return jax.nn.softmax(logits, axis=1)


# ---------------------------------------------------------------------------
if __name__ == "__main__":
    Cin, C1, C2, HID, NCLS = 4, 8, 16, 64, 6
    N, H, W = 2, 16, 16

    key = jax.random.PRNGKey(0)
    ks = jax.random.split(key, 16)
    params = {
        # conv stack (bias=False; eval-mode BatchNorm statistics)
        "w_c1": 0.2 * jax.random.normal(ks[0], (C1, Cin, 3, 3), jnp.float32),
        "g1": 1.0 + 0.05 * jax.random.normal(ks[1], (C1,), jnp.float32),
        "b1": 0.05 * jax.random.normal(ks[2], (C1,), jnp.float32),
        "m1": 0.05 * jax.random.normal(ks[3], (C1,), jnp.float32),
        "v1": 0.9 + 0.1 * jax.random.uniform(ks[4], (C1,), jnp.float32),
        "w_c2": 0.2 * jax.random.normal(ks[5], (C2, C1, 3, 3), jnp.float32),
        "g2": 1.0 + 0.05 * jax.random.normal(ks[6], (C2,), jnp.float32),
        "b2": 0.05 * jax.random.normal(ks[7], (C2,), jnp.float32),
        "m2": 0.05 * jax.random.normal(ks[8], (C2,), jnp.float32),
        "v2": 0.9 + 0.1 * jax.random.uniform(ks[9], (C2,), jnp.float32),
        # linear stack
        "w_l1": 0.1 * jax.random.normal(ks[10], (HID, C2 * 4 * 4), jnp.float32),
        "b_l1": 0.05 * jax.random.normal(ks[11], (HID,), jnp.float32),
        "w_l2": 0.1 * jax.random.normal(ks[12], (NCLS, HID), jnp.float32),
        "b_l2": 0.05 * jax.random.normal(ks[13], (NCLS,), jnp.float32),
    }

    x = jax.random.normal(ks[14], (N, Cin, H, W), jnp.float32)   # NCHW, like PyTorch

    packed = pack_params(params)                     # one-time static repack
    out = jax.jit(classifier_forward)(x, packed)
    out = jax.block_until_ready(out)

    ref = reference_forward(x, params)
    assert out.shape == (N, NCLS), out.shape
    assert bool(jnp.all(jnp.isfinite(out)))
    # rows sum to 1 up to the approx-reciprocal error
    assert bool(jnp.allclose(jnp.sum(out, axis=1), 1.0, atol=2e-3))
    # bf16-packed weights vs. the f32 reference -> slightly looser tolerance
    assert bool(jnp.allclose(out, ref, rtol=2e-2, atol=2e-3))

    print("KERNEL_OK")
</pallas_src>

<mosaic_0001>
module attributes {stable_mosaic.version = 11 : i64} {
  func.func @_classifier_kernel(%arg0: i32, %arg1: memref<2x9x72xf32, #tpu.memory_space<vmem>>, %arg2: memref<2x9x72xf32, #tpu.memory_space<vmem>>, %arg3: memref<3x72x128xbf16, #tpu.memory_space<vmem>>, %arg4: memref<1x128xf32, #tpu.memory_space<vmem>>, %arg5: memref<384x128xbf16, #tpu.memory_space<vmem>>, %arg6: memref<1x128xf32, #tpu.memory_space<vmem>>, %arg7: memref<1024x64xbf16, #tpu.memory_space<vmem>>, %arg8: memref<1x64xf32, #tpu.memory_space<vmem>>, %arg9: memref<64x6xf32, #tpu.memory_space<vmem>>, %arg10: memref<1x6xf32, #tpu.memory_space<vmem>>, %arg11: memref<2x6xf32, #tpu.memory_space<vmem>>) attributes {dimension_semantics = [#tpu.dimension_semantics<parallel>], iteration_bounds = array<i64: 1>, scalar_prefetch = 0 : i64, scratch_operands = 0 : i64, tpu.core_type = #tpu.core_type<tc>, window_params = [{transform_indices = @transform_0, window_bounds = array<i64: 2, 9, 72>}, {transform_indices = @transform_1, window_bounds = array<i64: 2, 9, 72>}, {pipeline_mode = #tpu.pipeline_mode<synchronous>, transform_indices = @transform_2, window_bounds = array<i64: 3, 72, 128>}, {pipeline_mode = #tpu.pipeline_mode<synchronous>, transform_indices = @transform_3, window_bounds = array<i64: 1, 128>}, {pipeline_mode = #tpu.pipeline_mode<synchronous>, transform_indices = @transform_4, window_bounds = array<i64: 384, 128>}, {pipeline_mode = #tpu.pipeline_mode<synchronous>, transform_indices = @transform_5, window_bounds = array<i64: 1, 128>}, {pipeline_mode = #tpu.pipeline_mode<synchronous>, transform_indices = @transform_6, window_bounds = array<i64: 1024, 64>}, {pipeline_mode = #tpu.pipeline_mode<synchronous>, transform_indices = @transform_7, window_bounds = array<i64: 1, 64>}, {pipeline_mode = #tpu.pipeline_mode<synchronous>, transform_indices = @transform_8, window_bounds = array<i64: 64, 6>}, {pipeline_mode = #tpu.pipeline_mode<synchronous>, transform_indices = @transform_9, window_bounds = array<i64: 1, 6>}, {transform_indices = @transform_10, window_bounds = array<i64: 2, 6>}]} {
    %c0 = arith.constant 0 : index
    %c0_0 = arith.constant 0 : index
    %c0_1 = arith.constant 0 : index
    %0 = vector.load %arg1[%c0, %c0_0, %c0_1] : memref<2x9x72xf32, #tpu.memory_space<vmem>>, vector<2x9x72xf32>
    %c0_2 = arith.constant 0 : index
    %c0_3 = arith.constant 0 : index
    %c0_4 = arith.constant 0 : index
    %1 = vector.load %arg2[%c0_2, %c0_3, %c0_4] : memref<2x9x72xf32, #tpu.memory_space<vmem>>, vector<2x9x72xf32>
    %2 = vector.extract_strided_slice %0 {offsets = [0, 0, 0], sizes = [2, 8, 72], strides = [1, 1, 1]} : vector<2x9x72xf32> to vector<2x8x72xf32>
    %3 = vector.extract_strided_slice %1 {offsets = [0, 0, 0], sizes = [2, 8, 72], strides = [1, 1, 1]} : vector<2x9x72xf32> to vector<2x8x72xf32>
    %4 = vector.extract_strided_slice %1 {offsets = [0, 0, 0], sizes = [2, 8, 72], strides = [1, 1, 1]} : vector<2x9x72xf32> to vector<2x8x72xf32>
    %5 = vector.extract_strided_slice %0 {offsets = [0, 1, 0], sizes = [2, 8, 72], strides = [1, 1, 1]} : vector<2x9x72xf32> to vector<2x8x72xf32>
    %6 = vector.extract_strided_slice %0 {offsets = [0, 1, 0], sizes = [2, 8, 72], strides = [1, 1, 1]} : vector<2x9x72xf32> to vector<2x8x72xf32>
    %7 = vector.extract_strided_slice %1 {offsets = [0, 1, 0], sizes = [2, 8, 72], strides = [1, 1, 1]} : vector<2x9x72xf32> to vector<2x8x72xf32>
    %8 = tpu.concatenate %2, %3 in 1 : vector<2x8x72xf32>, vector<2x8x72xf32> -> vector<2x16x72xf32>
    %9 = vector.shape_cast %8 : vector<2x16x72xf32> to vector<32x72xf32>
    %10 = arith.truncf %9 : vector<32x72xf32> to vector<32x72xbf16>
    %c0_5 = arith.constant 0 : index
    %c0_6 = arith.constant 0 : index
    %c0_7 = arith.constant 0 : index
    %11 = vector.load %arg3[%c0_5, %c0_6, %c0_7] : memref<3x72x128xbf16, #tpu.memory_space<vmem>>, vector<1x72x128xbf16>
    %12 = vector.shape_cast %11 : vector<1x72x128xbf16> to vector<72x128xbf16>
    %cst = arith.constant dense<0.000000e+00> : vector<32x128xf32>
    %13 = tpu.matmul %10, %12, %cst {dimension_numbers = #tpu.dot_dimension_numbers<[1], [0], [0], [1], [0, 0, 1, 1], [], []>} : vector<32x72xbf16>, vector<72x128xbf16>, vector<32x128xf32> -> vector<32x128xf32>
    %14 = tpu.concatenate %4, %5 in 1 : vector<2x8x72xf32>, vector<2x8x72xf32> -> vector<2x16x72xf32>
    %15 = vector.shape_cast %14 : vector<2x16x72xf32> to vector<32x72xf32>
    %16 = arith.truncf %15 : vector<32x72xf32> to vector<32x72xbf16>
    %c1 = arith.constant 1 : index
    %c0_8 = arith.constant 0 : index
    %c0_9 = arith.constant 0 : index
    %17 = vector.load %arg3[%c1, %c0_8, %c0_9] : memref<3x72x128xbf16, #tpu.memory_space<vmem>>, vector<1x72x128xbf16>
    %18 = vector.shape_cast %17 : vector<1x72x128xbf16> to vector<72x128xbf16>
    %cst_10 = arith.constant dense<0.000000e+00> : vector<32x128xf32>
    %19 = tpu.matmul %16, %18, %cst_10 {dimension_numbers = #tpu.dot_dimension_numbers<[1], [0], [0], [1], [0, 0, 1, 1], [], []>} : vector<32x72xbf16>, vector<72x128xbf16>, vector<32x128xf32> -> vector<32x128xf32>
    %20 = arith.addf %13, %19 : vector<32x128xf32>
    %21 = tpu.concatenate %6, %7 in 1 : vector<2x8x72xf32>, vector<2x8x72xf32> -> vector<2x16x72xf32>
    %22 = vector.shape_cast %21 : vector<2x16x72xf32> to vector<32x72xf32>
    %23 = arith.truncf %22 : vector<32x72xf32> to vector<32x72xbf16>
    %c2 = arith.constant 2 : index
    %c0_11 = arith.constant 0 : index
    %c0_12 = arith.constant 0 : index
    %24 = vector.load %arg3[%c2, %c0_11, %c0_12] : memref<3x72x128xbf16, #tpu.memory_space<vmem>>, vector<1x72x128xbf16>
    %25 = vector.shape_cast %24 : vector<1x72x128xbf16> to vector<72x128xbf16>
    %cst_13 = arith.constant dense<0.000000e+00> : vector<32x128xf32>
    %26 = tpu.matmul %23, %25, %cst_13 {dimension_numbers = #tpu.dot_dimension_numbers<[1], [0], [0], [1], [0, 0, 1, 1], [], []>} : vector<32x72xbf16>, vector<72x128xbf16>, vector<32x128xf32> -> vector<32x128xf32>
    %27 = arith.addf %20, %26 : vector<32x128xf32>
    %c0_14 = arith.constant 0 : index
    %c0_15 = arith.constant 0 : index
    %28 = vector.load %arg4[%c0_14, %c0_15] : memref<1x128xf32, #tpu.memory_space<vmem>>, vector<1x128xf32>
    %29 = vector.broadcast %28 : vector<1x128xf32> to vector<32x128xf32>
    %30 = arith.addf %27, %29 : vector<32x128xf32>
    %cst_16 = arith.constant 0.000000e+00 : f32
    %31 = vector.broadcast %cst_16 : f32 to vector<32x128xf32>
    %32 = arith.maximumf %30, %31 : vector<32x128xf32>
    %33 = vector.shape_cast %32 : vector<32x128xf32> to vector<2x16x128xf32>
    %34 = vector.extract_strided_slice %33 {offsets = [0, 0, 0], sizes = [2, 8, 128], strides = [1, 1, 1]} : vector<2x16x128xf32> to vector<2x8x128xf32>
    %35 = vector.shape_cast %34 : vector<2x8x128xf32> to vector<16x128xf32>
    %36 = vector.extract_strided_slice %33 {offsets = [0, 8, 0], sizes = [2, 8, 128], strides = [1, 1, 1]} : vector<2x16x128xf32> to vector<2x8x128xf32>
    %37 = vector.shape_cast %36 : vector<2x8x128xf32> to vector<16x128xf32>
    %cst_17 = arith.constant 0.000000e+00 : f32
    %38 = vector.broadcast %cst_17 : f32 to vector<2x1x128xf32>
    %39 = vector.extract_strided_slice %33 {offsets = [0, 8, 0], sizes = [2, 7, 128], strides = [1, 1, 1]} : vector<2x16x128xf32> to vector<2x7x128xf32>
    %40 = tpu.concatenate %38, %39 in 1 : vector<2x1x128xf32>, vector<2x7x128xf32> -> vector<2x8x128xf32>
    %41 = vector.shape_cast %40 : vector<2x8x128xf32> to vector<16x128xf32>
    %42 = tpu.concatenate %41, %35, %37 in 1 : vector<16x128xf32>, vector<16x128xf32>, vector<16x128xf32> -> vector<16x384xf32>
    %43 = arith.truncf %42 : vector<16x384xf32> to vector<16x384xbf16>
    %c0_18 = arith.constant 0 : index
    %c0_19 = arith.constant 0 : index
    %44 = vector.load %arg5[%c0_18, %c0_19] : memref<384x128xbf16, #tpu.memory_space<vmem>>, vector<384x128xbf16>
    %cst_20 = arith.constant dense<0.000000e+00> : vector<16x128xf32>
    %45 = tpu.matmul %43, %44, %cst_20 {dimension_numbers = #tpu.dot_dimension_numbers<[1], [0], [0], [1], [0, 0, 1, 1], [], []>} : vector<16x384xbf16>, vector<384x128xbf16>, vector<16x128xf32> -> vector<16x128xf32>
    %c0_21 = arith.constant 0 : index
    %c0_22 = arith.constant 0 : index
    %46 = vector.load %arg6[%c0_21, %c0_22] : memref<1x128xf32, #tpu.memory_space<vmem>>, vector<1x128xf32>
    %47 = vector.broadcast %46 : vector<1x128xf32> to vector<16x128xf32>
    %48 = arith.addf %45, %47 : vector<16x128xf32>
    %cst_23 = arith.constant 0.000000e+00 : f32
    %49 = vector.broadcast %cst_23 : f32 to vector<16x128xf32>
    %50 = arith.maximumf %48, %49 : vector<16x128xf32>
    %51 = vector.shape_cast %50 : vector<16x128xf32> to vector<2x8x128xf32>
    %52 = vector.extract_strided_slice %51 {offsets = [0, 0, 0], sizes = [2, 1, 128], strides = [1, 1, 1]} : vector<2x8x128xf32> to vector<2x1x128xf32>
    %53 = vector.shape_cast %52 : vector<2x1x128xf32> to vector<2x128xf32>
    %54 = vector.extract_strided_slice %51 {offsets = [0, 1, 0], sizes = [2, 1, 128], strides = [1, 1, 1]} : vector<2x8x128xf32> to vector<2x1x128xf32>
    %55 = vector.shape_cast %54 : vector<2x1x128xf32> to vector<2x128xf32>
    %56 = vector.extract_strided_slice %51 {offsets = [0, 2, 0], sizes = [2, 1, 128], strides = [1, 1, 1]} : vector<2x8x128xf32> to vector<2x1x128xf32>
    %57 = vector.shape_cast %56 : vector<2x1x128xf32> to vector<2x128xf32>
    %58 = vector.extract_strided_slice %51 {offsets = [0, 3, 0], sizes = [2, 1, 128], strides = [1, 1, 1]} : vector<2x8x128xf32> to vector<2x1x128xf32>
    %59 = vector.shape_cast %58 : vector<2x1x128xf32> to vector<2x128xf32>
    %60 = vector.extract_strided_slice %51 {offsets = [0, 4, 0], sizes = [2, 1, 128], strides = [1, 1, 1]} : vector<2x8x128xf32> to vector<2x1x128xf32>
    %61 = vector.shape_cast %60 : vector<2x1x128xf32> to vector<2x128xf32>
    %62 = vector.extract_strided_slice %51 {offsets = [0, 5, 0], sizes = [2, 1, 128], strides = [1, 1, 1]} : vector<2x8x128xf32> to vector<2x1x128xf32>
    %63 = vector.shape_cast %62 : vector<2x1x128xf32> to vector<2x128xf32>
    %64 = vector.extract_strided_slice %51 {offsets = [0, 6, 0], sizes = [2, 1, 128], strides = [1, 1, 1]} : vector<2x8x128xf32> to vector<2x1x128xf32>
    %65 = vector.shape_cast %64 : vector<2x1x128xf32> to vector<2x128xf32>
    %66 = vector.extract_strided_slice %51 {offsets = [0, 7, 0], sizes = [2, 1, 128], strides = [1, 1, 1]} : vector<2x8x128xf32> to vector<2x1x128xf32>
    %67 = vector.shape_cast %66 : vector<2x1x128xf32> to vector<2x128xf32>
    %68 = tpu.concatenate %53, %55, %57, %59, %61, %63, %65, %67 in 1 : vector<2x128xf32>, vector<2x128xf32>, vector<2x128xf32>, vector<2x128xf32>, vector<2x128xf32>, vector<2x128xf32>, vector<2x128xf32>, vector<2x128xf32> -> vector<2x1024xf32>
    %69 = arith.truncf %68 : vector<2x1024xf32> to vector<2x1024xbf16>
    %c0_24 = arith.constant 0 : index
    %c0_25 = arith.constant 0 : index
    %70 = vector.load %arg7[%c0_24, %c0_25] : memref<1024x64xbf16, #tpu.memory_space<vmem>>, vector<1024x64xbf16>
    %cst_26 = arith.constant dense<0.000000e+00> : vector<2x64xf32>
    %71 = tpu.matmul %69, %70, %cst_26 {dimension_numbers = #tpu.dot_dimension_numbers<[1], [0], [0], [1], [0, 0, 1, 1], [], []>} : vector<2x1024xbf16>, vector<1024x64xbf16>, vector<2x64xf32> -> vector<2x64xf32>
    %c0_27 = arith.constant 0 : index
    %c0_28 = arith.constant 0 : index
    %72 = vector.load %arg8[%c0_27, %c0_28] : memref<1x64xf32, #tpu.memory_space<vmem>>, vector<1x64xf32>
    %73 = vector.broadcast %72 : vector<1x64xf32> to vector<2x64xf32>
    %74 = arith.addf %71, %73 : vector<2x64xf32>
    %cst_29 = arith.constant 0.000000e+00 : f32
    %75 = vector.broadcast %cst_29 : f32 to vector<2x64xf32>
    %76 = arith.maximumf %74, %75 : vector<2x64xf32>
    %c0_30 = arith.constant 0 : index
    %c0_31 = arith.constant 0 : index
    %77 = vector.load %arg9[%c0_30, %c0_31] : memref<64x6xf32, #tpu.memory_space<vmem>>, vector<64x6xf32>
    %cst_32 = arith.constant dense<0.000000e+00> : vector<2x6xf32>
    %78 = tpu.matmul %76, %77, %cst_32 {dimension_numbers = #tpu.dot_dimension_numbers<[1], [0], [0], [1], [0, 0, 1, 1], [], []>} : vector<2x64xf32>, vector<64x6xf32>, vector<2x6xf32> -> vector<2x6xf32>
    %c0_33 = arith.constant 0 : index
    %c0_34 = arith.constant 0 : index
    %79 = vector.load %arg10[%c0_33, %c0_34] : memref<1x6xf32, #tpu.memory_space<vmem>>, vector<1x6xf32>
    %80 = vector.broadcast %79 : vector<1x6xf32> to vector<2x6xf32>
    %81 = arith.addf %78, %80 : vector<2x6xf32>
    %cst_35 = arith.constant dense<0xFF800000> : vector<2xf32>
    %82 = vector.multi_reduction <maximumf>, %81, %cst_35 [1] : vector<2x6xf32> to vector<2xf32>
    %83 = vector.shape_cast %82 : vector<2xf32> to vector<2x1xf32>
    %84 = vector.broadcast %83 : vector<2x1xf32> to vector<2x6xf32>
    %85 = arith.subf %81, %84 : vector<2x6xf32>
    %86 = math.exp %85 : vector<2x6xf32>
    %cst_36 = arith.constant dense<0.000000e+00> : vector<2xf32>
    %87 = vector.multi_reduction <add>, %86, %cst_36 [1] : vector<2x6xf32> to vector<2xf32>
    %88 = vector.shape_cast %87 : vector<2xf32> to vector<2x1xf32>
    %89 = tpu.reciprocal %88 {approx = true} : vector<2x1xf32> -> vector<2x1xf32>
    %90 = vector.broadcast %89 : vector<2x1xf32> to vector<2x6xf32>
    %91 = arith.mulf %86, %90 : vector<2x6xf32>
    %c0_37 = arith.constant 0 : index
    %c0_38 = arith.constant 0 : index
    %92 = vector.load %arg11[%c0_37, %c0_38] : memref<2x6xf32, #tpu.memory_space<vmem>>, vector<2x6xf32>
    tpu.vector_store %arg11[%c0_37, %c0_38], %91 {strides = array<i32>} : memref<2x6xf32, #tpu.memory_space<vmem>>, vector<2x6xf32>,
    return
  }
  func.func @transform_0(%arg0: i32) -> (i32, i32, i32) {
    %c0_i32 = arith.constant 0 : i32
    %c0_i32_0 = arith.constant 0 : i32
    %c0_i32_1 = arith.constant 0 : i32
    return %arg0, %c0_i32, %c0_i32_0 : i32, i32, i32
  }
  func.func @transform_1(%arg0: i32) -> (i32, i32, i32) {
    %c0_i32 = arith.constant 0 : i32
    %c0_i32_0 = arith.constant 0 : i32
    %c0_i32_1 = arith.constant 0 : i32
    return %arg0, %c0_i32, %c0_i32_0 : i32, i32, i32
  }
  func.func @transform_2(%arg0: i32) -> (i32, i32, i32) {
    %c0_i32 = arith.constant 0 : i32
    %c0_i32_0 = arith.constant 0 : i32
    %c0_i32_1 = arith.constant 0 : i32
    %c0_i32_2 = arith.constant 0 : i32
    return %c0_i32, %c0_i32_0, %c0_i32_1 : i32, i32, i32
  }
  func.func @transform_3(%arg0: i32) -> (i32, i32) {
    %c0_i32 = arith.constant 0 : i32
    %c0_i32_0 = arith.constant 0 : i32
    %c0_i32_1 = arith.constant 0 : i32
    return %c0_i32, %c0_i32_0 : i32, i32
  }
  func.func @transform_4(%arg0: i32) -> (i32, i32) {
    %c0_i32 = arith.constant 0 : i32
    %c0_i32_0 = arith.constant 0 : i32
    %c0_i32_1 = arith.constant 0 : i32
    return %c0_i32, %c0_i32_0 : i32, i32
  }
  func.func @transform_5(%arg0: i32) -> (i32, i32) {
    %c0_i32 = arith.constant 0 : i32
    %c0_i32_0 = arith.constant 0 : i32
    %c0_i32_1 = arith.constant 0 : i32
    return %c0_i32, %c0_i32_0 : i32, i32
  }
  func.func @transform_6(%arg0: i32) -> (i32, i32) {
    %c0_i32 = arith.constant 0 : i32
    %c0_i32_0 = arith.constant 0 : i32
    %c0_i32_1 = arith.constant 0 : i32
    return %c0_i32, %c0_i32_0 : i32, i32
  }
  func.func @transform_7(%arg0: i32) -> (i32, i32) {
    %c0_i32 = arith.constant 0 : i32
    %c0_i32_0 = arith.constant 0 : i32
    %c0_i32_1 = arith.constant 0 : i32
    return %c0_i32, %c0_i32_0 : i32, i32
  }
  func.func @transform_8(%arg0: i32) -> (i32, i32) {
    %c0_i32 = arith.constant 0 : i32
    %c0_i32_0 = arith.constant 0 : i32
    %c0_i32_1 = arith.constant 0 : i32
    return %c0_i32, %c0_i32_0 : i32, i32
  }
  func.func @transform_9(%arg0: i32) -> (i32, i32) {
    %c0_i32 = arith.constant 0 : i32
    %c0_i32_0 = arith.constant 0 : i32
    %c0_i32_1 = arith.constant 0 : i32
    return %c0_i32, %c0_i32_0 : i32, i32
  }
  func.func @transform_10(%arg0: i32) -> (i32, i32) {
    %c0_i32 = arith.constant 0 : i32
    %c0_i32_0 = arith.constant 0 : i32
    return %arg0, %c0_i32 : i32, i32
  }
}

</mosaic_0001>

<bundles_post_ra>
// kernel: classifier_forward.1
= control target key start
LH: loop header
LB: loop body
LE: loop exit
PB: predicated region body
PF: predicated region fallthrough
CT: control target
= control target key end

     0   :  { %vm115_vm0 = vcmask 1043456   ;;  %vm60_vm1 = vcmask 1046528   ;;  %vm108_vm2 = vcmask 588800   ;;  %s2512_s0 = inlined_call_operand.vmem [shape: f32[2,9,72], index: 0, kind: input, shape index: {}]   ;;  %s2513_s1 = inlined_call_operand.vmem [shape: f32[2,9,72], index: 1, kind: input, shape index: {}]   ;;  %s2514_s2 = inlined_call_operand.vmem [shape: bf16[3,72,128], index: 2, kind: input, shape index: {}]   ;;  %s2515_s3 = inlined_call_operand.vmem [shape: f32[1,128], index: 3, kind: input, shape index: {}]   ;;  %s2516_s4 = inlined_call_operand.vmem [shape: bf16[384,128], index: 4, kind: input, shape index: {}]   ;;  %s2517_s5 = inlined_call_operand.vmem [shape: f32[1,128], index: 5, kind: input, shape index: {}]   ;;  %s2518_s6 = inlined_call_operand.vmem [shape: bf16[1024,64], index: 6, kind: input, shape index: {}]   ;;  %s2519_s7 = inlined_call_operand.vmem [shape: f32[1,64], index: 7, kind: input, shape index: {}]   ;;  %s2520_s8 = inlined_call_operand.vmem [shape: f32[64,6], index: 8, kind: input, shape index: {}]   ;;  %s2521_s9 = inlined_call_operand.vmem [shape: f32[1,6], index: 9, kind: input, shape index: {}]   ;;  %s2522_s10 = inlined_call_operand.hbm [shape: f32[2,6], index: 10, kind: output, shape index: {}]  }
   0x1   :  { %v1886_v0 = vld [vmem:[%s2514_s2 + $0x44] ss:$0 sps:$4 sm:$0xff]   ;;  %v1888_v1 = vld [vmem:[%s2514_s2 + $0x3c] sm:$0xff]   ;;  %v1890_v6 = vld [vmem:[%s2514_s2 + $0x34] sm:$0xff]  }
   0x2   :  { %v1887_v2 = vld [vmem:[%s2514_s2 + $0x20] ss:$0 sps:$4 sm:$0xff]   ;;  %1880 = vmatprep.subr.msk.bf16.mxu0 %vm115_vm0, %v1886_v0  ;;  %v117_v3 = vsel %vm115_vm0, %v1886_v0, 0  ;;  %v1889_v4 = vld [vmem:[%s2514_s2 + $0x18] sm:$0xff]   ;;  %v1891_v7 = vld [vmem:[%s2514_s2 + $0x10] sm:$0xff]  }
   0x3   :  { %1881 = vmatprep.subr.msk.bf16.mxu1 %vm115_vm0, %v1887_v2  ;;  %1800 = vmatpush3.bf16.msra.mxu0 %v117_v3  ;;  %v202_v5 = vsel %vm115_vm0, %v1887_v2, 0  ;;  %v1892_v8 = vld [vmem:[%s2514_s2 + $0x2c] sm:$0xff]   ;;  %v37_v10 = vld [vmem:[%s2512_s0] sm:$0xff]  ;;  %v38_v11 = vld [vmem:[%s2512_s0 + $0x8] sm:$0x1] }
   0x4   :  { %1814 = vmatpush3.bf16.msra.mxu1 %v202_v5  ;;  %1801 = vmatprep.subr.bf16.mxu0 %v1888_v1  ;;  %v1893_v9 = vld [vmem:[%s2514_s2 + $0x8] sm:$0xff]   ;;  %v41_v12 = vld [vmem:[%s2513_s1] sm:$0xff]  ;;  %v61_v14 = vrot.slane %v37_v10, 1  ;;  %v62_v15 = vrot.slane %v38_v11, 1  ;;  %v39_v16 = vld [vmem:[%s2512_s0 + $0x10] sm:$0xff] }
   0x5   :  { %1815 = vmatprep.subr.bf16.mxu1 %v1889_v4  ;;  %v42_v13 = vld [vmem:[%s2513_s1 + $0x8] sm:$0x1]  ;;  %v45_v18 = vpack.c.bf16 %v41_v12, %v37_v10  ;;  %v40_v19 = vld [vmem:[%s2512_s0 + $0x18] sm:$0x1]  ;;  %v64_v20 = vrot.slane %v39_v16, 1  ;;  %v1895_v21 = vld [vmem:[%s2514_s2] sm:$0xff]  }
   0x6   :  { %v1894_v17 = vld [vmem:[%s2514_s2 + $0x24] sm:$0xff]   ;;  %v63_v22 = vsel %vm60_vm1, %v61_v14, %v62_v15  ;;  %v257_v23 = vrot.slane %v41_v12, 1  ;;  %v258_v24 = vrot.slane %v42_v13, 1  ;;  %v65_v25 = vrot.slane %v40_v19, 1  ;;  %v44_v27 = vld [vmem:[%s2513_s1 + $0x18] sm:$0x1] }
   0x7   :  { %1802 = vmatpush3.bf16.msra.mxu0 %v1888_v1  ;;  %v69_v26 = vpack.c.bf16 %v63_v22, %v41_v12  ;;  %1823 = vmatprep.mubr.msk.bf16.mxu1 %vm108_vm2, %v45_v18  ;;  %v1896_v28 = vld [vmem:[%s2514_s2 + $0x68] ss:$0 sps:$4 sm:$0xff]   ;;  %v43_v29 = vld [vmem:[%s2513_s1 + $0x10] sm:$0xff]  ;;  %v261_v33 = vrot.slane %v44_v27, 1  ;;  %v1897_v36 = vld [vmem:[%s2514_s2 + $0x60] sm:$0xff]  }
   0x8   :  { %1816 = vmatpush3.bf16.msra.mxu1 %v1889_v4  ;;  %1803 = vmatprep.subr.bf16.mxu0 %v1890_v6  ;;  %v66_v30 = vsel %vm60_vm1, %v64_v20, %v65_v25  ;;  %v260_v31 = vrot.slane %v43_v29, 1  ;;  %v259_v32 = vsel %vm60_vm1, %v257_v23, %v258_v24  ;;  %v311_v34 = vsel %vm115_vm0, %v1896_v28, 0  ;;  %v1898_v39 = vld [vmem:[%s2514_s2 + $0x58] sm:$0xff]   ;;  %v1899_v40 = vld [vmem:[%s2514_s2 + $0x50] sm:$0xff]   ;;  %v1900_v41 = vld [vmem:[%s2514_s2 + $0x48] sm:$0xff]  }
   0x9   :  { %1817 = vmatprep.subr.bf16.mxu1 %v1891_v7  ;;  %1809 = vmatprep.mubr.msk.bf16.mxu0 %vm108_vm2, %v69_v26  ;;  %v70_v35 = vpack.c.bf16 %v66_v30, %v43_v29  ;;  %v46_v37 = vpack.c.bf16 %v43_v29, %v39_v16  ;;  %v265_v38 = vpack.c.bf16 %v259_v32, %v63_v22 }
   0xa   :  { %v262_v42 = vsel %vm60_vm1, %v260_v31, %v261_v33 }
   0xb   :  { %1804 = vmatpush3.bf16.msra.mxu0 %v1890_v6  ;;  %v266_v43 = vpack.c.bf16 %v262_v42, %v66_v30 }
   0xc   :  { %1818 = vmatpush3.bf16.msra.mxu1 %v1891_v7  ;;  %1805 = vmatprep.subr.bf16.mxu0 %v1892_v8 }
   0xd   :  { %1819 = vmatprep.subr.bf16.mxu1 %v1893_v9 }
   0xf   :  { %1806 = vmatpush3.bf16.msra.mxu0 %v1892_v8 }
  0x10   :  { %1820 = vmatpush3.bf16.msra.mxu1 %v1893_v9  ;;  %1807 = vmatprep.subr.bf16.mxu0 %v1894_v17 }
  0x11   :  { %1821 = vmatprep.subr.bf16.mxu1 %v1895_v21 }
  0x13   :  { %1808 = vmatpush3.bf16.msra.mxu0 %v1894_v17 }
  0x14   :  { %1822 = vmatpush3.bf16.msra.mxu1 %v1895_v21  ;;  %1882 = vmatprep.subr.msk.bf16.mxu0 %vm115_vm0, %v1896_v28 }
  0x16   :  { %1810 = vmatmul.mubr.msk.bf16.vlgmr.msra.gmra.mxu0 %vm108_vm2, %v70_v35 }
  0x17   :  { %1824 = vmatmul.mubr.msk.bf16.vlgmr.msra.gmra.mxu1 %vm108_vm2, %v46_v37  ;;  %1828 = vmatpush3.bf16.msra.mxu0 %v311_v34 }
  0x18   :  { %1829 = vmatprep.subr.bf16.mxu0 %v1897_v36  ;;  %1837 = vmatprep.mubr.msk.bf16.mxu0 %vm108_vm2, %v265_v38 }
  0x1b   :  { %1830 = vmatpush3.bf16.msra.mxu0 %v1897_v36 }
  0x1c   :  { %1831 = vmatprep.subr.bf16.mxu0 %v1898_v39 }
  0x1f   :  { %1832 = vmatpush3.bf16.msra.mxu0 %v1898_v39 }
  0x20   :  { %1833 = vmatprep.subr.bf16.mxu0 %v1899_v40 }
  0x23   :  { %1834 = vmatpush3.bf16.msra.mxu0 %v1899_v40 }
  0x24   :  { %1835 = vmatprep.subr.bf16.mxu0 %v1900_v41 }
  0x27   :  { %1836 = vmatpush3.bf16.msra.mxu0 %v1900_v41 }
  0x2a   :  { %1838 = vmatmul.mubr.msk.bf16.vlgmr.msra.gmra.mxu0 %vm108_vm2, %v266_v43 }
  0x2b   :  { %15 = vsyncpa [#allocation3], 0  ;;  %v1901_v44 = vld [vmem:[%s2516_s4 + $0xb8] sm:$0xff]   ;;  %v2015_v45 = vmov 0.0   ;;  %v1904_v48 = vld [vmem:[%s2516_s4 + $0xb0] sm:$0xff]   ;;  %vm2016_vm3 = vmmov 0  }
  0x2c   :  { %1841 = vmatprep.subr.bf16.mxu0 %v2015_v45  ;;  %v1902_v46 = vld [vmem:[%s2516_s4 + $0x78] sm:$0xff]   ;;  %v1905_v49 = vld [vmem:[%s2516_s4 + $0x70] sm:$0xff]   ;;  %v1907_v51 = vld [vmem:[%s2516_s4 + $0xa8] sm:$0xff]   ;;  %1857 = vmatprep.mubr.msk.bf16.mxu0 %vm2016_vm3, %v2015_v45  ;;  %vm387_vm4 = vcmask 1040384   ;;  %vm679_vm7 = vcmask 1041409   ;;  %vm1412_vm8 = vcmask 523264  }
  0x2d   :  { %1842 = vmatpush3.bf16.msra.mxu0 %v1901_v44  ;;  %v1903_v47 = vld [vmem:[%s2516_s4 + $0x38] sm:$0xff]   ;;  %1671 = vmatprep.subr.bf16.mxu1 %v1902_v46  ;;  %v1906_v50 = vld [vmem:[%s2516_s4 + $0x30] sm:$0xff]   ;;  %v1908_v52 = vld [vmem:[%s2516_s4 + $0x68] sm:$0xff]   ;;  %vm1486_vm9 = vcmask 41984   ;;  %s2017_s15 = smov [#allocation2]  }
  0x2e   :  { %1843 = vmatprep.subr.bf16.mxu0 %v2015_v45  ;;  %1672 = vmatpush3.bf16.msra.mxu1 %v1903_v47  ;;  %v1909_v53 = vld [vmem:[%s2516_s4 + $0x28] sm:$0xff]   ;;  %v1911_v54 = vld [vmem:[%s2516_s4 + $0x60] sm:$0xff]   ;;  %v1913_v57 = vld [vmem:[%s2516_s4 + $0x98] sm:$0xff]  }
  0x2f   :  { %1673 = vmatprep.subr.bf16.mxu1 %v1905_v49  ;;  %v1910_v55 = vld [vmem:[%s2516_s4 + $0xa0] sm:$0xff]   ;;  %v1914_v58 = vld [vmem:[%s2516_s4 + $0x58] sm:$0xff]   ;;  %v1916_v60 = vld [vmem:[%s2516_s4 + $0x90] sm:$0xff]  }
  0x30   :  { %v1912_v56 = vld [vmem:[%s2516_s4 + $0x20] sm:$0xff]   ;;  %v1915_v59 = vld [vmem:[%s2516_s4 + $0x18] sm:$0xff]   ;;  %v1917_v61 = vld [vmem:[%s2516_s4 + $0x50] sm:$0xff]  }
  0x31   :  { %1844 = vmatpush3.bf16.msra.mxu0 %v1904_v48  ;;  %v1918_v62 = vld [vmem:[%s2516_s4 + $0x10] sm:$0xff]   ;;  %v1919_v63 = vld [vmem:[%s2516_s4 + $0x88] sm:$0xff]   ;;  %v1922_v2 = vld [vmem:[%s2516_s4 + $0x80] sm:$0xff]  }
  0x32   :  { %1845 = vmatprep.subr.bf16.mxu0 %v2015_v45  ;;  %1674 = vmatpush3.bf16.msra.mxu1 %v1906_v50  ;;  %v1920_v0 = vld [vmem:[%s2516_s4 + $0x48] sm:$0xff]   ;;  %v1923_v3 = vld [vmem:[%s2516_s4 + $0x40] sm:$0xff]   ;;  %v1925_v5 = vld [vmem:[%s2518_s6 + $0x78] sm:$0xff]  }
  0x33   :  { %1675 = vmatprep.subr.bf16.mxu1 %v1908_v52  ;;  %v1921_v1 = vld [vmem:[%s2516_s4 + $0x8] sm:$0xff]   ;;  %v1924_v4 = vld [vmem:[%s2516_s4] sm:$0xff]   ;;  %v1927_v6 = vld [vmem:[%s2518_s6 + $0xf8] sm:$0xff]  }
  0x34   :  { %v1552_v16 = vld [vmem:[%s2515_s3] ss:$0 sm:$0xff]  ;;  %vm1578_vm5 = vmneg %vm387_vm4  ;;  %v1928_v37 = vld [vmem:[%s2518_s6 + $0xb8] sm:$0xff]  }
  0x35   :  { %1846 = vmatpush3.bf16.msra.mxu0 %v1907_v51  ;;  %v1931_v41 = vld [vmem:[%s2518_s6 + $0xf0] sm:$0xff]   ;;  %vm1580_vm6 = vmpackc.low %vm1578_vm5, %vm1578_vm5  ;;  %v1926_v42 = vld [vmem:[%s2518_s6 + $0x38] sm:$0xff]  }
  0x36   :  { %1847 = vmatprep.subr.bf16.mxu0 %v2015_v45  ;;  %1676 = vmatpush3.bf16.msra.mxu1 %v1909_v53  ;;  %v1929_v44 = vld [vmem:[%s2518_s6 + $0x70] sm:$0xff]   ;;  %v1935_v47 = vld [vmem:[%s2518_s6 + $0xe8] sm:$0xff]   ;;  %v1937_v52 = vld [vmem:[%s2518_s6 + $0x60] sm:$0xff]  }
  0x37   :  { %1677 = vmatprep.subr.bf16.mxu1 %v1911_v54  ;;  %v1932_v46 = vld [vmem:[%s2518_s6 + $0xb0] sm:$0xff]   ;;  %v1933_v49 = vld [vmem:[%s2518_s6 + $0x68] sm:$0xff]   ;;  %v1938_v53 = vld [vmem:[%s2518_s6 + $0x20] sm:$0xff]  }
  0x38   :  { %v1930_v48 = vld [vmem:[%s2518_s6 + $0x30] sm:$0xff]   ;;  %v1936_v50 = vld [vmem:[%s2518_s6 + $0xa8] sm:$0xff]   ;;  %v1939_v54 = vld [vmem:[%s2518_s6 + $0xe0] sm:$0xff]  }
  0x39   :  { %1848 = vmatpush3.bf16.msra.mxu0 %v1910_v55  ;;  %v1934_v51 = vld [vmem:[%s2518_s6 + $0x28] sm:$0xff]   ;;  %v1940_v55 = vld [vmem:[%s2518_s6 + $0xa0] sm:$0xff]  }
  0x3a   :  { %1849 = vmatprep.subr.bf16.mxu0 %v2015_v45  ;;  %1678 = vmatpush3.bf16.msra.mxu1 %v1912_v56  ;;  %v1941_v56 = vld [vmem:[%s2518_s6 + $0x58] sm:$0xff]  }
  0x3b   :  { %1679 = vmatprep.subr.bf16.mxu1 %v1914_v58  ;;  %v1943_v58 = vld [vmem:[%s2518_s6 + $0xd8] sm:$0xff]  }
  0x3d   :  { %1850 = vmatpush3.bf16.msra.mxu0 %v1913_v57  ;;  %v1942_v57 = vld [vmem:[%s2518_s6 + $0x18] sm:$0xff]  }
  0x3e   :  { %1851 = vmatprep.subr.bf16.mxu0 %v2015_v45  ;;  %1680 = vmatpush3.bf16.msra.mxu1 %v1915_v59  ;;  %v1944_v59 = vld [vmem:[%s2518_s6 + $0x98] sm:$0xff]  }
  0x3f   :  { %1681 = vmatprep.subr.bf16.mxu1 %v1917_v61  ;;  %v1946_v61 = vld [vmem:[%s2518_s6 + $0x10] sm:$0xff]  }
  0x41   :  { %1852 = vmatpush3.bf16.msra.mxu0 %v1916_v60  ;;  %v1945_v60 = vld [vmem:[%s2518_s6 + $0x50] sm:$0xff]  }
  0x42   :  { %1853 = vmatprep.subr.bf16.mxu0 %v2015_v45  ;;  %1682 = vmatpush3.bf16.msra.mxu1 %v1918_v62  ;;  %v1947_v62 = vld [vmem:[%s2518_s6 + $0xd0] sm:$0xff]  }
  0x43   :  { %1683 = vmatprep.subr.bf16.mxu1 %v1920_v0  ;;  %v1949_v0 = vld [vmem:[%s2518_s6 + $0x48] sm:$0xff]  }
  0x45   :  { %1854 = vmatpush3.bf16.msra.mxu0 %v1919_v63  ;;  %v1948_v63 = vld [vmem:[%s2518_s6 + $0x90] sm:$0xff]  }
  0x46   :  { %1855 = vmatprep.subr.bf16.mxu0 %v2015_v45  ;;  %1684 = vmatpush3.bf16.msra.mxu1 %v1921_v1  ;;  %v1950_v1 = vld [vmem:[%s2518_s6 + $0x8] sm:$0xff]  }
  0x47   :  { %1685 = vmatprep.subr.bf16.mxu1 %v1923_v3  ;;  %v1952_v3 = vld [vmem:[%s2518_s6 + $0x88] sm:$0xff]  }
  0x49   :  { %1856 = vmatpush3.bf16.msra.mxu0 %v1922_v2  ;;  %v1951_v2 = vld [vmem:[%s2518_s6 + $0xc8] sm:$0xff]  }
  0x4a   :  { %1686 = vmatpush3.bf16.msra.mxu1 %v1924_v4  ;;  %1724 = vmatprep.subr.bf16.mxu0 %v1927_v6  ;;  %v1953_v4 = vld [vmem:[%s2518_s6 + $0x40] sm:$0xff]  }
  0x4b   :  { %1702 = vmatprep.subr.bf16.mxu1 %v1925_v5  ;;  %v1954_v5 = vld [vmem:[%s2518_s6] sm:$0xff]  }
  0x4c   :  { %v1955_v6 = vld [vmem:[%s2518_s6 + $0xc0] sm:$0xff]  }
  0xd6   :  { %v1811_v7 = vpop.f32.mrf.mxu0 }
  0xd7   :  { %v1825_v8 = vpop.f32.mrf.mxu1 }
  0xd8   :  { %v153_v9 = vpop.f32.mrf.mxu0  ;;  %v247_v14 = vadd.f32 %v1825_v8, %v1811_v7  ;;  %v1956_v7 = vld [vmem:[%s2518_s6 + $0x80] sm:$0xff]   ;;  %v1957_v8 = vld [vmem:[%s2518_s6 + $0x178] sm:$0xff]  }
  0xd9   :  { %v238_v10 = vpop.f32.mrf.mxu1 }
  0xda   :  { %v1812_v11 = vpop.f32.mrf.mxu0  ;;  %v239_v17 = vadd.f32 %v238_v10, %v153_v9  ;;  %v1959_v9 = vld [vmem:[%s2518_s6 + $0x1f8] sm:$0xff]  }
  0xdb   :  { %v1826_v12 = vpop.f32.mrf.mxu1 }
  0xdc   :  { %v156_v13 = vpop.f32.mrf.mxu0  ;;  %v250_v21 = vadd.f32 %v1826_v12, %v1812_v11 }
  0xdd   :  { %v241_v19 = vpop.f32.mrf.mxu1 }
  0xde   :  { %v242_v25 = vadd.f32 %v241_v19, %v156_v13  ;;  %v1553_v13 = vld [vmem:[%s2517_s5] ss:$0 sm:$0xff]  ;;  %s1505_s5 = sshll.u32 %s2017_s15, 4  ;;  %s1506_s5 = int_to_ptr.vmem [resolvable:$true] %s1505_s5 }
  0xdf   :  { %p1998_p1 = scmp.lt.s32.totalorder %s1506_s5, %s1506_s5 }
  0xea   :  { %v1839_v15 = vpop.f32.mrf.mxu0 }
  0xeb   :  { %v364_v18 = vadd.f32 %v1839_v15, %v247_v14 }
  0xec   :  { %v347_v20 = vpop.f32.mrf.mxu0 }
  0xed   :  { %v375_v22 = vadd.f32 %v1552_v16, %v364_v18  ;;  %v362_v23 = vadd.f32 %v347_v20, %v239_v17 }
  0xee   :  { %v1840_v24 = vpop.f32.mrf.mxu0 }
  0xef   :  { %v373_v26 = vadd.f32 %v1552_v16, %v362_v23  ;;  %v365_v27 = vadd.f32 %v1840_v24, %v250_v21  ;;  %v379_v29 = vmax.f32 %v375_v22, 0.0 }
  0xf0   :  { %v350_v28 = vpop.f32.mrf.mxu0 }
  0xf1   :  { %v377_v30 = vmax.f32 %v373_v26, 0.0  ;;  %v376_v31 = vadd.f32 %v1552_v16, %v365_v27  ;;  %v363_v32 = vadd.f32 %v350_v28, %v242_v25 }
  0xf3   :  { %v380_v33 = vmax.f32 %v376_v31, 0.0  ;;  %v374_v34 = vadd.f32 %v1552_v16, %v363_v32  ;;  %v391_v35 = vpack.c.bf16 %v379_v29, %v377_v30 }
  0xf5   :  { %v378_v36 = vmax.f32 %v374_v34, 0.0  ;;  %624 = vmatprep.mubr.bf16.mxu1 %v391_v35  ;;  %v384_v38 = vrot.slane %v380_v33, 7 }
  0xf7   :  { %v383_v39 = vrot.slane %v378_v36, 7  ;;  %v392_v40 = vpack.c.bf16 %v380_v33, %v378_v36 }
  0xf9   :  { %v1581_v43 = vpack.c.bf16 %v384_v38, %v383_v39  ;;  %1858 = vmatmul.mubr.bf16.vlgmr.msra.gmra.mxu0 %v392_v40  ;;  %v1958_v40 = vld [vmem:[%s2518_s6 + $0x138] sm:$0xff]  }
  0xfa   :  { %1725 = vmatpush3.bf16.msra.mxu0 %v1928_v37 }
  0xfb   :  { %1582 = vmatmul.mubr.msk.bf16.vlgmr.msra.gmra.mxu1 %vm1580_vm6, %v1581_v43  ;;  %1726 = vmatprep.subr.bf16.mxu0 %v1931_v41 }
  0xfc   :  { %1703 = vmatpush3.bf16.msra.mxu1 %v1926_v42 }
  0xfd   :  { %1704 = vmatprep.subr.bf16.mxu1 %v1929_v44 }
  0xfe   :  { %1727 = vmatpush3.bf16.msra.mxu0 %v1932_v46 }
  0xff   :  { %1728 = vmatprep.subr.bf16.mxu0 %v1935_v47 }
 0x100   :  { %1705 = vmatpush3.bf16.msra.mxu1 %v1930_v48  ;;  %v1960_v48 = vld [vmem:[%s2518_s6 + $0x1b8] sm:$0xff]  }
 0x101   :  { %1706 = vmatprep.subr.bf16.mxu1 %v1933_v49 }
 0x102   :  { %1729 = vmatpush3.bf16.msra.mxu0 %v1936_v50 }
 0x103   :  { %1730 = vmatprep.subr.bf16.mxu0 %v1939_v54  ;;  %v1962_v54 = vld [vmem:[%s2518_s6 + $0x130] sm:$0xff]  }
 0x104   :  { %1707 = vmatpush3.bf16.msra.mxu1 %v1934_v51  ;;  %v1961_v51 = vld [vmem:[%s2518_s6 + $0x170] sm:$0xff]  }
 0x105   :  { %1708 = vmatprep.subr.bf16.mxu1 %v1937_v52  ;;  %v1963_v52 = vld [vmem:[%s2518_s6 + $0x1f0] sm:$0xff]  }
 0x106   :  { %1731 = vmatpush3.bf16.msra.mxu0 %v1940_v55  ;;  %v1964_v55 = vld [vmem:[%s2518_s6 + $0x1b0] sm:$0xff]  }
 0x107   :  { %1732 = vmatprep.subr.bf16.mxu0 %v1943_v58  ;;  %v1966_v58 = vld [vmem:[%s2518_s6 + $0x128] sm:$0xff]  }
 0x108   :  { %1709 = vmatpush3.bf16.msra.mxu1 %v1938_v53 }
 0x109   :  { %1710 = vmatprep.subr.bf16.mxu1 %v1941_v56  ;;  %v1965_v56 = vld [vmem:[%s2518_s6 + $0x168] sm:$0xff]  }
 0x10a   :  { %1733 = vmatpush3.bf16.msra.mxu0 %v1944_v59  ;;  %v1968_v59 = vld [vmem:[%s2518_s6 + $0x1a8] sm:$0xff]  }
 0x10b   :  { %1734 = vmatprep.subr.bf16.mxu0 %v1947_v62  ;;  %v1970_v62 = vld [vmem:[%s2518_s6 + $0x120] sm:$0xff]  }
 0x10c   :  { %1711 = vmatpush3.bf16.msra.mxu1 %v1942_v57  ;;  %v1967_v57 = vld [vmem:[%s2518_s6 + $0x1e8] sm:$0xff]  }
 0x10d   :  { %1712 = vmatprep.subr.bf16.mxu1 %v1945_v60  ;;  %v1969_v60 = vld [vmem:[%s2518_s6 + $0x160] sm:$0xff]  }
 0x10e   :  { %1735 = vmatpush3.bf16.msra.mxu0 %v1948_v63  ;;  %v1972_v63 = vld [vmem:[%s2518_s6 + $0x1a0] sm:$0xff]  }
 0x10f   :  { %1736 = vmatprep.subr.bf16.mxu0 %v1951_v2  ;;  %v1974_v2 = vld [vmem:[%s2518_s6 + $0x118] sm:$0xff]  }
 0x110   :  { %1713 = vmatpush3.bf16.msra.mxu1 %v1946_v61  ;;  %v1971_v61 = vld [vmem:[%s2518_s6 + $0x1e0] sm:$0xff]  }
 0x111   :  { %1714 = vmatprep.subr.bf16.mxu1 %v1949_v0  ;;  %v1973_v0 = vld [vmem:[%s2518_s6 + $0x158] sm:$0xff]  }
 0x112   :  { %1737 = vmatpush3.bf16.msra.mxu0 %v1952_v3  ;;  %v1976_v3 = vld [vmem:[%s2518_s6 + $0x198] sm:$0xff]  }
 0x113   :  { %1738 = vmatprep.subr.bf16.mxu0 %v1955_v6  ;;  %v1978_v6 = vld [vmem:[%s2518_s6 + $0x110] sm:$0xff]  }
 0x114   :  { %1715 = vmatpush3.bf16.msra.mxu1 %v1950_v1  ;;  %v1975_v1 = vld [vmem:[%s2518_s6 + $0x1d8] sm:$0xff]  }
 0x115   :  { %1716 = vmatprep.subr.bf16.mxu1 %v1953_v4  ;;  %v1977_v4 = vld [vmem:[%s2518_s6 + $0x150] sm:$0xff]  }
 0x116   :  { %1739 = vmatpush3.bf16.msra.mxu0 %v1956_v7  ;;  %v1980_v7 = vld [vmem:[%s2518_s6 + $0x190] sm:$0xff]  }
 0x117   :  { %1768 = vmatprep.subr.bf16.mxu0 %v1959_v9  ;;  %v1983_v9 = vld [vmem:[%s2518_s6 + $0x1c8] sm:$0xff]  }
 0x118   :  { %1717 = vmatpush3.bf16.msra.mxu1 %v1954_v5  ;;  %v1979_v5 = vld [vmem:[%s2518_s6 + $0x1d0] sm:$0xff]  }
 0x119   :  { %1746 = vmatprep.subr.bf16.mxu1 %v1957_v8  ;;  %v1981_v8 = vld [vmem:[%s2518_s6 + $0x148] sm:$0xff]  }
 0x1b9   :  { %v667_v10 = vpop.f32.mrf.mxu0 }
 0x1bb   :  { %v1687_v11 = vpop.f32.mrf.mxu1  ;;  %v1859_v12 = vpop.f32.mrf.mxu0 }
 0x1bc   :  { %v1985_v12 = vld [vmem:[%s2518_s6 + $0x140] sm:$0xff]  }
 0x1bd   :  { %v1688_v14 = vpop.f32.mrf.mxu1  ;;  %v670_v15 = vpop.f32.mrf.mxu0 }
 0x1be   :  { %v1689_v16 = vadd.f32 %v1688_v14, %v1687_v11  ;;  %v1984_v11 = vld [vmem:[%s2518_s6 + $0x188] sm:$0xff]  }
 0x1bf   :  { %v1690_v17 = vpop.f32.mrf.mxu1  ;;  %v1860_v18 = vpop.f32.mrf.mxu0 }
 0x1c0   :  { %v627_v19 = vadd.f32 %v1689_v16, %v1553_v13  ;;  %v1986_v16 = vld [vmem:[%s2518_s6 + $0x100] sm:$0xff]  }
 0x1c1   :  { %v1691_v20 = vpop.f32.mrf.mxu1  ;;  %v1988_v18 = vld [vmem:[%s2518_s6 + $0x180] sm:$0xff]  }
 0x1c2   :  { %v668_v21 = vadd.f32 %v667_v10, %v627_v19  ;;  %v1692_v22 = vadd.f32 %v1691_v20, %v1690_v17  ;;  %v1982_v10 = vld [vmem:[%s2518_s6 + $0x108] sm:$0xff]  }
 0x1c4   :  { %v2348_v23 = vmax.f32 %v668_v21, 0.0  ;;  %v630_v24 = vadd.f32 %v1692_v22, %v1553_v13  ;;  %v1987_v13 = vld [vmem:[%s2518_s6 + $0x1c0] sm:$0xff]  }
 0x1c6   :  { %v671_v25 = vadd.f32 %v670_v15, %v630_v24  ;;  %v682_v27 = vrot.slane %v2348_v23, 1  ;;  %v689_v28 = vrot.slane %v2348_v23, 3  ;;  %v685_v29 = vrot.slane %v2348_v23, 2 }
 0x1c7   :  { %v697_v35 = vrot.slane %v2348_v23, 5  ;;  %v705_v42 = vrot.slane %v2348_v23, 7  ;;  %v693_v17 = vrot.slane %v2348_v23, 4  ;;  %v701_v19 = vrot.slane %v2348_v23, 6 }
 0x1c8   :  { %v2350_v26 = vmax.f32 %v671_v25, 0.0  ;;  %v1403_v25 = vld [vmem:[%s2520_s8 + $0x30] sm:$0xff] }
 0x1ca   :  { %v683_v30 = vsel %vm679_vm7, %v2350_v26, %v682_v27  ;;  %v678_v31 = vrot.slane %v2350_v26, 7  ;;  %v690_v32 = vrot.slane %v2350_v26, 2  ;;  %v686_v33 = vrot.slane %v2350_v26, 1  ;;  %v1401_v27 = vld [vmem:[%s2520_s8 + $0x20] sm:$0xff] }
 0x1cb   :  { %v710_v34 = vpack.c.bf16 %v683_v30, %v683_v30  ;;  %v698_v36 = vrot.slane %v2350_v26, 4  ;;  %v706_v37 = vrot.slane %v2350_v26, 6  ;;  %v694_v14 = vrot.slane %v2350_v26, 3  ;;  %v1398_v30 = vld [vmem:[%s2520_s8 + $0x8] sm:$0xff] }
 0x1cc   :  { %v680_v38 = vsel %vm679_vm7, %v678_v31, %v2348_v23  ;;  %v691_v39 = vsel %vm679_vm7, %v690_v32, %v689_v28  ;;  %v687_v41 = vsel %vm679_vm7, %v686_v33, %v685_v29  ;;  %v702_v15 = vrot.slane %v2350_v26, 5  ;;  %v1404_v23 = vld [vmem:[%s2520_s8 + $0x38] sm:$0xff]  ;;  %v1402_v26 = vld [vmem:[%s2520_s8 + $0x28] sm:$0xff]  ;;  %v1399_v29 = vld [vmem:[%s2520_s8 + $0x10] sm:$0xff] }
 0x1cd   :  { %1268 = vmatprep.mubr.bf16.mxu1 %v710_v34  ;;  %v709_v43 = vpack.c.bf16 %v680_v38, %v680_v38  ;;  %v712_v44 = vpack.c.bf16 %v691_v39, %v691_v39  ;;  %v711_v46 = vpack.c.bf16 %v687_v41, %v687_v41  ;;  %v699_v47 = vsel %vm679_vm7, %v698_v36, %v697_v35  ;;  %v1400_v28 = vld [vmem:[%s2520_s8 + $0x18] sm:$0xff]  ;;  %v1397_v31 = vld [vmem:[%s2520_s8] sm:$0xff] }
 0x1ce   :  { %v714_v49 = vpack.c.bf16 %v699_v47, %v699_v47  ;;  %v707_v50 = vsel %vm679_vm7, %v706_v37, %v705_v42  ;;  %v695_v20 = vsel %vm679_vm7, %v694_v14, %v693_v17  ;;  %v703_v21 = vsel %vm679_vm7, %v702_v15, %v701_v19  ;;  %v1583_v41 = vld [vmem:[%s2519_s7] ss:$0 sm:$0xff] }
 0x1cf   :  { %1269 = vmatmul.mubr.bf16.vlgmr.msra.gmra.mxu1 %v709_v43  ;;  %1308 = vmatprep.mubr.bf16.mxu0 %v712_v44  ;;  %v716_v53 = vpack.c.bf16 %v707_v50, %v707_v50  ;;  %v713_v22 = vpack.c.bf16 %v695_v20, %v695_v20  ;;  %v715_v24 = vpack.c.bf16 %v703_v21, %v703_v21 }
 0x1d0   :  { %1747 = vmatpush3.bf16.msra.mxu1 %v1958_v40  ;;  %1309 = vmatmul.mubr.bf16.vlgmr.msra.gmra.mxu0 %v711_v46 }
 0x1d1   :  { %1348 = vmatprep.mubr.bf16.mxu1 %v714_v49  ;;  %1769 = vmatpush3.bf16.msra.mxu0 %v1960_v48 }
 0x1d2   :  { %1388 = vmatprep.mubr.bf16.mxu0 %v716_v53  ;;  %1748 = vmatprep.subr.bf16.mxu1 %v1961_v51 }
 0x1d3   :  { %1770 = vmatprep.subr.bf16.mxu0 %v1963_v52 }
 0x1d4   :  { %1749 = vmatpush3.bf16.msra.mxu1 %v1962_v54 }
 0x1d5   :  { %1771 = vmatpush3.bf16.msra.mxu0 %v1964_v55  ;;  %1750 = vmatprep.subr.bf16.mxu1 %v1965_v56 }
 0x1d6   :  { %1772 = vmatprep.subr.bf16.mxu0 %v1967_v57 }
 0x1d8   :  { %1751 = vmatpush3.bf16.msra.mxu1 %v1966_v58  ;;  %v1648_v58 = vld [vmem:[%s2521_s9] ss:$0 sm:$0xff]  ;;  %s1993_s9 = scalar_lea.vmem %s1506_s5, 32 }
 0x1d9   :  { %1773 = vmatpush3.bf16.msra.mxu0 %v1968_v59  ;;  %1752 = vmatprep.subr.bf16.mxu1 %v1969_v60  ;;  %p1994_p0 = scmp.ne.s32.totalorder %s1506_s5, %s1993_s9  ;;  %p1999_p2 = scmp.lt.s32.totalorder %s1993_s9, %s1993_s9 }
 0x1da   :  { %1774 = vmatprep.subr.bf16.mxu0 %v1971_v61 }
 0x1db   :  { %p2000_p3 = por %p1999_p2, %p1998_p1 }
 0x1dc   :  { %1753 = vmatpush3.bf16.msra.mxu1 %v1970_v62 }
 0x1dd   :  { %1775 = vmatpush3.bf16.msra.mxu0 %v1972_v63  ;;  %1754 = vmatprep.subr.bf16.mxu1 %v1973_v0  ;;  %p2001_p4 = pnand %p2000_p3, %p1994_p0 }
 0x1de   :  { %1776 = vmatprep.subr.bf16.mxu0 %v1975_v1 }
 0x1e0   :  { %1755 = vmatpush3.bf16.msra.mxu1 %v1974_v2 }
 0x1e1   :  { %1777 = vmatpush3.bf16.msra.mxu0 %v1976_v3  ;;  %1756 = vmatprep.subr.bf16.mxu1 %v1977_v4 }
 0x1e2   :  { %1778 = vmatprep.subr.bf16.mxu0 %v1979_v5 }
 0x1e4   :  { %1757 = vmatpush3.bf16.msra.mxu1 %v1978_v6 }
 0x1e5   :  { %1779 = vmatpush3.bf16.msra.mxu0 %v1980_v7  ;;  %1758 = vmatprep.subr.bf16.mxu1 %v1981_v8 }
 0x1e6   :  { %1780 = vmatprep.subr.bf16.mxu0 %v1983_v9 }
 0x1e8   :  { %1759 = vmatpush3.bf16.msra.mxu1 %v1982_v10 }
 0x1e9   :  { %1781 = vmatpush3.bf16.msra.mxu0 %v1984_v11  ;;  %1760 = vmatprep.subr.bf16.mxu1 %v1985_v12 }
 0x1ea   :  { %1782 = vmatprep.subr.bf16.mxu0 %v1987_v13 }
 0x1ec   :  { %1761 = vmatpush3.bf16.msra.mxu1 %v1986_v16 }
 0x1ed   :  { %1783 = vmatpush3.bf16.msra.mxu0 %v1988_v18  ;;  %1861 = vmatprep.subr.mxu1 %v2015_v45 }
 0x1ef   :  { %1349 = vmatmul.mubr.bf16.vlgmr.msra.gmra.mxu1 %v713_v22 }
 0x1f0   :  { %1389 = vmatmul.mubr.bf16.vlgmr.msra.gmra.mxu0 %v715_v24  ;;  %1877 = vmatprep.mubr.msk.f32.mxu1 %vm2016_vm3, %v2015_v45 }
 0x1f1   :  { %1862 = vmatpush3.msra.mxu1 %v1404_v23 }
 0x1f2   :  { %1863 = vmatprep.subr.mxu1 %v2015_v45 }
 0x1f3   :  { %1864 = vmatpush3.msra.mxu1 %v1403_v25 }
 0x1f4   :  { %1865 = vmatprep.subr.mxu1 %v2015_v45 }
 0x1f5   :  { %1866 = vmatpush3.msra.mxu1 %v1402_v26 }
 0x1f6   :  { %1867 = vmatprep.subr.mxu1 %v2015_v45 }
 0x1f7   :  { %1868 = vmatpush3.msra.mxu1 %v1401_v27 }
 0x1f8   :  { %1869 = vmatprep.subr.mxu1 %v2015_v45 }
 0x1f9   :  { %1870 = vmatpush3.msra.mxu1 %v1400_v28 }
 0x1fa   :  { %1871 = vmatprep.subr.mxu1 %v2015_v45 }
 0x1fb   :  { %1872 = vmatpush3.msra.mxu1 %v1399_v29 }
 0x1fc   :  { %1873 = vmatprep.subr.mxu1 %v2015_v45 }
 0x1fd   :  { %1874 = vmatpush3.msra.mxu1 %v1398_v30 }
 0x1fe   :  { %1875 = vmatprep.subr.mxu1 %v2015_v45 }
 0x1ff   :  { %1876 = vmatpush3.msra.mxu1 %v1397_v31 }
 0x28f   :  { %v1718_v32 = vpop.f32.mrf.mxu1 }
 0x290   :  { %v1740_v33 = vpop.f32.mrf.mxu0 }
 0x291   :  { %v1719_v34 = vpop.f32.mrf.mxu1 }
 0x292   :  { %v1741_v35 = vpop.f32.mrf.mxu0  ;;  %v1720_v40 = vadd.f32 %v1719_v34, %v1718_v32 }
 0x293   :  { %v1721_v36 = vpop.f32.mrf.mxu1  ;;  %v1742_v43 = vadd.f32 %v1741_v35, %v1740_v33 }
 0x294   :  { %v1743_v37 = vpop.f32.mrf.mxu0  ;;  %v1271_v42 = vadd.f32 %v1720_v40, %v1583_v41 }
 0x295   :  { %v1722_v38 = vpop.f32.mrf.mxu1 }
 0x296   :  { %v1744_v39 = vpop.f32.mrf.mxu0  ;;  %v1311_v45 = vadd.f32 %v1742_v43, %v1271_v42 }
 0x2af   :  { %v1762_v44 = vpop.f32.mrf.mxu1 }
 0x2b0   :  { %v1784_v46 = vpop.f32.mrf.mxu0 }
 0x2b1   :  { %v1763_v47 = vpop.f32.mrf.mxu1 }
 0x2b2   :  { %v1764_v48 = vadd.f32 %v1763_v47, %v1762_v44  ;;  %v1785_v49 = vpop.f32.mrf.mxu0 }
 0x2b3   :  { %v1786_v50 = vadd.f32 %v1785_v49, %v1784_v46  ;;  %v1765_v51 = vpop.f32.mrf.mxu1 }
 0x2b4   :  { %v1351_v52 = vadd.f32 %v1764_v48, %v1311_v45  ;;  %v1787_v53 = vpop.f32.mrf.mxu0 }
 0x2b5   :  { %v1766_v54 = vpop.f32.mrf.mxu1 }
 0x2b6   :  { %v1391_v55 = vadd.f32 %v1786_v50, %v1351_v52  ;;  %v1788_v56 = vpop.f32.mrf.mxu0 }
 0x2b8   :  { %v1396_v57 = vmax.f32 %v1391_v55, 0.0 }
 0x2ba   :  { %1878 = vmatmul.mubr.msk.f32.vlgmr.msra.gmra.mxu1 %vm1412_vm8, %v1396_v57 }
 0x37a   :  { %v1482_v59 = vpop.f32.mrf.mxu1 }
 0x37b   :  { %v1483_v60 = vadd.f32 %v1648_v58, %v1482_v59 }
 0x37c   :  { %v1879_v61 = vpop.f32.mrf.mxu1 }
 0x37d   :  { %v1487_v62 = vsel %vm1486_vm9, %v1483_v60, -inf }
 0x37e   :  { %1488 = vmax.xlane.f32.xlu0 %v1487_v62 }
 0x407   :  { %v1489_v63 = vpop.xlane.xlu0 %1488 }
 0x408   :  { %v1490_v0 = vsub.f32 %v1483_v60, %v1489_v63 }
 0x40a   :  { %v1491_v1 = vmul.f32 1.442695, %v1490_v0 }
 0x40c   :  { %1989 = vpow2.f32 %v1491_v1 }
 0x419   :  { %v1990_v2 = vpop.eup %1989 }
 0x41a   :  { %v1493_v3 = vsel %vm1486_vm9, %v1990_v2, 0.0 }
 0x41b   :  { %1494 = vadd.xlane.f32.xlu0 %v1493_v3 }
 0x4a4   :  { %v1495_v4 = vpop.xlane.xlu0 %1494 }
 0x4a5   :  { %1991 = vrcp.f32 %v1495_v4 }
 0x4b2   :  { %v1992_v5 = vpop.eup %1991 }
 0x4b3   :  { %v1497_v6 = vmul.f32 %v1992_v5, %v1990_v2 }
 0x4b5   :  { %1498 = vst.msk [vmem:[#allocation2] sm:$0x3] %vm1486_vm9, %v1497_v6 }
 0x4b6   :  { %2004 = shalt.err (!%p2001_p4)
}
 0x4b7   :  { %1508 = dma.vmem_to_hbm [thread:$0]  %s1506_s5, 32, %s2522_s10, [#allocation3]  }
 0x4b8   :  { %2013 = dma.done.wait [#allocation3], 32  }
 0x4b9   :  { %2014 = vsyncadd [#allocation3], 4294967264 }
 0x4ba   :  { %1512 = vsyncpa [#allocation3], 1 }

</bundles_post_ra>
